<compile_context>
chip_gen: v7x
topology: tpu7x:2x2x1
jax: 0.10.0
libtpu: 0.0.40
codegen_flags: <defaults>
</compile_context>

<pallas_src>
import functools

import jax
import jax.numpy as jnp
from jax.experimental import pallas as pl
from jax.experimental.pallas import tpu as pltpu

_LANE = 128
_SUBLANE = 8


def _round_up(x, m):
    return (x + m - 1) // m * m


def _cdiv(a, b):
    return (a + b - 1) // b


def discriminator_kernel(x_ref,
                         w12_ref, b12_ref,
                         w3_ref, b3_ref,
                         w4_ref, b4_ref,
                         o_ref):
    """One batch tile: 3 MXU matmuls + 2 LeakyReLUs, fully fused."""
    cdt = w12_ref.dtype                      # MXU operand dtype (bf16 or f32)

    # Folded Linear(in -> hidden) . Linear(hidden -> 512): one matmul.
    h = jnp.dot(x_ref[...].astype(cdt), w12_ref[...],
                preferred_element_type=jnp.float32) + b12_ref[...]
    # LeakyReLU(0.1) on the VPU in f32.
    h = jnp.maximum(h, 0.1 * h)

    # Linear(512 -> hidden)
    h = jnp.dot(h.astype(cdt), w3_ref[...],
                preferred_element_type=jnp.float32) + b3_ref[...]
    h = jnp.maximum(h, 0.1 * h)

    # Linear(hidden -> out).  The weight is zero-padded to 128 lanes so the
    # MXU matmul is full-width; only the real out_size columns are stored
    # (narrow HBM output -> no write amplification).
    out = jnp.dot(h.astype(cdt), w4_ref[...],
                  preferred_element_type=jnp.float32) + b4_ref[...]
    o_ref[...] = out[:, :o_ref.shape[-1]].astype(o_ref.dtype)


def prepare_params(params, use_bf16=True):
    """One-time weight preparation (hoisted out of the per-call path).

    params: dict with w{1..4}: [in, out], b{1..4}: [1, out]
            (weights transposed relative to torch.nn.Linear's [out, in]).
    Returns (prep_dict, out_size).
    """
    f32 = jnp.float32
    cdt = jnp.bfloat16 if use_bf16 else f32
    hi = jax.lax.Precision.HIGHEST

    # Fold Linear1 . Linear2 (no activation between them; algebraically exact):
    #   (x @ w1 + b1) @ w2 + b2  ==  x @ (w1 @ w2) + (b1 @ w2 + b2)
    w1, w2 = params["w1"].astype(f32), params["w2"].astype(f32)
    b1, b2 = params["b1"].astype(f32), params["b2"].astype(f32)
    w12 = jnp.dot(w1, w2, precision=hi)                 # [in, 512]
    b12 = jnp.dot(b1, w2, precision=hi) + b2            # [1, 512]

    hidden, out_size = params["w4"].shape
    out_pad = _round_up(max(out_size, _LANE), _LANE)
    w4p = jnp.zeros((hidden, out_pad), f32).at[:, :out_size].set(
        params["w4"].astype(f32))
    b4p = jnp.zeros((1, out_pad), f32).at[:, :out_size].set(
        params["b4"].astype(f32))

    prep = {
        "w12": w12.astype(cdt), "b12": b12,
        "w3": params["w3"].astype(cdt), "b3": params["b3"].astype(f32),
        "w4": w4p.astype(cdt), "b4": b4p,
    }
    return prep, int(out_size)


@functools.partial(jax.jit, static_argnames=("out_size", "max_tile_b"))
def discriminator_forward(x, prep, *, out_size, max_tile_b=2048):
    """Fused Discriminator MLP forward on pre-prepared weights."""
    f32 = jnp.float32
    batch, input_size = x.shape
    mid = prep["w12"].shape[1]          # 512
    hidden = prep["w3"].shape[1]
    out_pad = prep["w4"].shape[1]

    # ---- Batch tiling: derive the tile from a step count so padding is <8
    # rows per step, and use >=2 steps when batch >= 16 (two TCs on v7x). ----
    n_steps = max(_cdiv(batch, max_tile_b),
                  2 if batch >= 2 * _SUBLANE else 1)
    tile_b = _round_up(_cdiv(batch, n_steps), _SUBLANE)
    batch_p = tile_b * n_steps
    if batch_p != batch:
        x = jnp.pad(x, ((0, batch_p - batch), (0, 0)))

    # ---- VMEM limit from the actual per-step footprint; cap at 48 MiB so
    # v7x's 64 MiB physical VMEM keeps headroom for compiler scratch. ----
    w_item = prep["w12"].dtype.itemsize
    weight_bytes = ((input_size * mid + mid * hidden + hidden * out_pad) * w_item
                    + (mid + hidden + out_pad) * 4)
    io_bytes = 2 * tile_b * (input_size + out_size) * 4          # double-buffered
    temp_bytes = tile_b * mid * (4 + w_item) + tile_b * (hidden + out_pad) * 4
    vmem_limit = int(min(48 << 20,
                         max(24 << 20,
                             2 * weight_bytes + io_bytes + temp_bytes
                             + (4 << 20))))

    const2d = lambda i: (0, 0)
    in_specs = [
        pl.BlockSpec((tile_b, input_size), lambda i: (i, 0)),   # x (moving)
        pl.BlockSpec((input_size, mid), const2d),               # w12 (resident)
        pl.BlockSpec((1, mid), const2d),                        # b12
        pl.BlockSpec((mid, hidden), const2d),                   # w3
        pl.BlockSpec((1, hidden), const2d),                     # b3
        pl.BlockSpec((hidden, out_pad), const2d),               # w4 (lane-padded)
        pl.BlockSpec((1, out_pad), const2d),                    # b4 (lane-padded)
    ]
    # Narrow (un-padded) output in HBM: last dim == full array dim is legal.
    out_spec = pl.BlockSpec((tile_b, out_size), lambda i: (i, 0))

    flops = 2 * batch_p * (input_size * mid + mid * hidden + hidden * out_pad)
    bytes_accessed = (batch_p * input_size * 4 + weight_bytes
                      + batch_p * out_size * 4)
    cost = pl.CostEstimate(flops=flops, transcendentals=0,
                           bytes_accessed=bytes_accessed)

    out = pl.pallas_call(
        discriminator_kernel,
        out_shape=jax.ShapeDtypeStruct((batch_p, out_size), f32),
        grid=(n_steps,),
        in_specs=in_specs,
        out_specs=out_spec,
        compiler_params=pltpu.CompilerParams(
            dimension_semantics=("parallel",),
            vmem_limit_bytes=vmem_limit),
        cost_estimate=cost,
    )(x, prep["w12"], prep["b12"], prep["w3"], prep["b3"],
      prep["w4"], prep["b4"])

    return out[:batch]


def init_params(key, input_size, hidden_size, output_size):
    """Deterministic synthetic init (weights stored [in, out])."""
    ks = jax.random.split(key, 8)
    dims = [(input_size, hidden_size),
            (hidden_size, 512),
            (512, hidden_size),
            (hidden_size, output_size)]
    params = {}
    for i, (fan_in, fan_out) in enumerate(dims, start=1):
        scale = 1.0 / jnp.sqrt(jnp.float32(fan_in))
        params[f"w{i}"] = (jax.random.uniform(
            ks[2 * (i - 1)], (fan_in, fan_out),
            minval=-1.0, maxval=1.0, dtype=jnp.float32) * scale)
        # bias kept as [1, fan_out] for clean 2-D broadcast in the kernel
        params[f"b{i}"] = (jax.random.uniform(
            ks[2 * (i - 1) + 1], (1, fan_out),
            minval=-1.0, maxval=1.0, dtype=jnp.float32) * scale)
    return params


def reference_forward(x, p):
    """Pure-JAX unfolded reference matching the PyTorch module."""
    h = x @ p["w1"] + p["b1"]
    h = h @ p["w2"] + p["b2"]
    h = jnp.where(h > 0, h, 0.1 * h)
    h = h @ p["w3"] + p["b3"]
    h = jnp.where(h > 0, h, 0.1 * h)
    return h @ p["w4"] + p["b4"]


if __name__ == "__main__":
    input_size, hidden_size, output_size = 16, 32, 4

    key = jax.random.PRNGKey(0)
    k_x, k_p, k_x2 = jax.random.split(key, 3)
    params = init_params(k_p, input_size, hidden_size, output_size)

    # --- f32-operand path: tight structural check (single step, batch=8) ---
    prep_f32, out_size = prepare_params(params, use_bf16=False)
    x = jax.random.normal(k_x, (8, input_size), dtype=jnp.float32)
    out = jax.block_until_ready(
        discriminator_forward(x, prep_f32, out_size=out_size))
    ref = reference_forward(x, params)
    assert out.shape == (8, output_size)
    assert jnp.allclose(out, ref, atol=1e-3, rtol=1e-3), "f32 mismatch vs ref"

    # --- bf16-operand path (default): multi-step grid + batch padding ---
    prep, out_size = prepare_params(params, use_bf16=True)
    x2 = jax.random.normal(k_x2, (40, input_size), dtype=jnp.float32)
    ref2 = reference_forward(x2, params)

    # batch=40 -> 2 grid steps of tile_b=24 (v7x dual-TC friendly).
    out2 = jax.block_until_ready(
        discriminator_forward(x2, prep, out_size=out_size))
    assert out2.shape == (40, output_size)
    assert jnp.allclose(out2, ref2, atol=5e-2, rtol=5e-2), "bf16 mismatch"

    # Explicit small max tile -> 3 grid steps of tile_b=16 (padding path).
    out3 = jax.block_until_ready(
        discriminator_forward(x2, prep, out_size=out_size, max_tile_b=16))
    assert out3.shape == (40, output_size)
    assert jnp.allclose(out3, ref2, atol=5e-2, rtol=5e-2), "bf16 grid mismatch"

    print("KERNEL_OK")
</pallas_src>

<mosaic_0001>
module attributes {stable_mosaic.version = 11 : i64} {
  func.func @discriminator_kernel(%arg0: i32, %arg1: memref<8x16xf32, #tpu.memory_space<vmem>>, %arg2: memref<16x512xf32, #tpu.memory_space<vmem>>, %arg3: memref<1x512xf32, #tpu.memory_space<vmem>>, %arg4: memref<512x32xf32, #tpu.memory_space<vmem>>, %arg5: memref<1x32xf32, #tpu.memory_space<vmem>>, %arg6: memref<32x128xf32, #tpu.memory_space<vmem>>, %arg7: memref<1x128xf32, #tpu.memory_space<vmem>>, %arg8: memref<8x4xf32, #tpu.memory_space<vmem>>) attributes {dimension_semantics = [#tpu.dimension_semantics<parallel>], iteration_bounds = array<i64: 1>, scalar_prefetch = 0 : i64, scratch_operands = 0 : i64, tpu.core_type = #tpu.core_type<tc>, window_params = [{transform_indices = @transform_0, window_bounds = array<i64: 8, 16>}, {pipeline_mode = #tpu.pipeline_mode<synchronous>, transform_indices = @transform_1, window_bounds = array<i64: 16, 512>}, {pipeline_mode = #tpu.pipeline_mode<synchronous>, transform_indices = @transform_2, window_bounds = array<i64: 1, 512>}, {pipeline_mode = #tpu.pipeline_mode<synchronous>, transform_indices = @transform_3, window_bounds = array<i64: 512, 32>}, {pipeline_mode = #tpu.pipeline_mode<synchronous>, transform_indices = @transform_4, window_bounds = array<i64: 1, 32>}, {pipeline_mode = #tpu.pipeline_mode<synchronous>, transform_indices = @transform_5, window_bounds = array<i64: 32, 128>}, {pipeline_mode = #tpu.pipeline_mode<synchronous>, transform_indices = @transform_6, window_bounds = array<i64: 1, 128>}, {transform_indices = @transform_7, window_bounds = array<i64: 8, 4>}]} {
    %c0 = arith.constant 0 : index
    %c0_0 = arith.constant 0 : index
    %0 = vector.load %arg1[%c0, %c0_0] : memref<8x16xf32, #tpu.memory_space<vmem>>, vector<8x16xf32>
    %c0_1 = arith.constant 0 : index
    %c0_2 = arith.constant 0 : index
    %1 = vector.load %arg2[%c0_1, %c0_2] : memref<16x512xf32, #tpu.memory_space<vmem>>, vector<16x512xf32>
    %cst = arith.constant dense<0.000000e+00> : vector<8x512xf32>
    %2 = tpu.matmul %0, %1, %cst {dimension_numbers = #tpu.dot_dimension_numbers<[1], [0], [0], [1], [0, 0, 1, 1], [], []>} : vector<8x16xf32>, vector<16x512xf32>, vector<8x512xf32> -> vector<8x512xf32>
    %c0_3 = arith.constant 0 : index
    %c0_4 = arith.constant 0 : index
    %3 = vector.load %arg3[%c0_3, %c0_4] : memref<1x512xf32, #tpu.memory_space<vmem>>, vector<1x512xf32>
    %4 = vector.broadcast %3 : vector<1x512xf32> to vector<8x512xf32>
    %5 = arith.addf %2, %4 : vector<8x512xf32>
    %cst_5 = arith.constant 1.000000e-01 : f32
    %6 = vector.broadcast %cst_5 : f32 to vector<8x512xf32>
    %7 = arith.mulf %6, %5 : vector<8x512xf32>
    %8 = arith.maximumf %5, %7 : vector<8x512xf32>
    %c0_6 = arith.constant 0 : index
    %c0_7 = arith.constant 0 : index
    %9 = vector.load %arg4[%c0_6, %c0_7] : memref<512x32xf32, #tpu.memory_space<vmem>>, vector<512x32xf32>
    %cst_8 = arith.constant dense<0.000000e+00> : vector<8x32xf32>
    %10 = tpu.matmul %8, %9, %cst_8 {dimension_numbers = #tpu.dot_dimension_numbers<[1], [0], [0], [1], [0, 0, 1, 1], [], []>} : vector<8x512xf32>, vector<512x32xf32>, vector<8x32xf32> -> vector<8x32xf32>
    %c0_9 = arith.constant 0 : index
    %c0_10 = arith.constant 0 : index
    %11 = vector.load %arg5[%c0_9, %c0_10] : memref<1x32xf32, #tpu.memory_space<vmem>>, vector<1x32xf32>
    %12 = vector.broadcast %11 : vector<1x32xf32> to vector<8x32xf32>
    %13 = arith.addf %10, %12 : vector<8x32xf32>
    %cst_11 = arith.constant 1.000000e-01 : f32
    %14 = vector.broadcast %cst_11 : f32 to vector<8x32xf32>
    %15 = arith.mulf %14, %13 : vector<8x32xf32>
    %16 = arith.maximumf %13, %15 : vector<8x32xf32>
    %c0_12 = arith.constant 0 : index
    %c0_13 = arith.constant 0 : index
    %17 = vector.load %arg6[%c0_12, %c0_13] : memref<32x128xf32, #tpu.memory_space<vmem>>, vector<32x128xf32>
    %cst_14 = arith.constant dense<0.000000e+00> : vector<8x128xf32>
    %18 = tpu.matmul %16, %17, %cst_14 {dimension_numbers = #tpu.dot_dimension_numbers<[1], [0], [0], [1], [0, 0, 1, 1], [], []>} : vector<8x32xf32>, vector<32x128xf32>, vector<8x128xf32> -> vector<8x128xf32>
    %c0_15 = arith.constant 0 : index
    %c0_16 = arith.constant 0 : index
    %19 = vector.load %arg7[%c0_15, %c0_16] : memref<1x128xf32, #tpu.memory_space<vmem>>, vector<1x128xf32>
    %20 = vector.broadcast %19 : vector<1x128xf32> to vector<8x128xf32>
    %21 = arith.addf %18, %20 : vector<8x128xf32>
    %22 = vector.extract_strided_slice %21 {offsets = [0, 0], sizes = [8, 4], strides = [1, 1]} : vector<8x128xf32> to vector<8x4xf32>
    %c0_17 = arith.constant 0 : index
    %c0_18 = arith.constant 0 : index
    %23 = vector.load %arg8[%c0_17, %c0_18] : memref<8x4xf32, #tpu.memory_space<vmem>>, vector<8x4xf32>
    tpu.vector_store %arg8[%c0_17, %c0_18], %22 {strides = array<i32>} : memref<8x4xf32, #tpu.memory_space<vmem>>, vector<8x4xf32>,
    return
  }
  func.func @transform_0(%arg0: i32) -> (i32, i32) {
    %c0_i32 = arith.constant 0 : i32
    %c0_i32_0 = arith.constant 0 : i32
    return %arg0, %c0_i32 : i32, i32
  }
  func.func @transform_1(%arg0: i32) -> (i32, i32) {
    %c0_i32 = arith.constant 0 : i32
    %c0_i32_0 = arith.constant 0 : i32
    %c0_i32_1 = arith.constant 0 : i32
    return %c0_i32, %c0_i32_0 : i32, i32
  }
  func.func @transform_2(%arg0: i32) -> (i32, i32) {
    %c0_i32 = arith.constant 0 : i32
    %c0_i32_0 = arith.constant 0 : i32
    %c0_i32_1 = arith.constant 0 : i32
    return %c0_i32, %c0_i32_0 : i32, i32
  }
  func.func @transform_3(%arg0: i32) -> (i32, i32) {
    %c0_i32 = arith.constant 0 : i32
    %c0_i32_0 = arith.constant 0 : i32
    %c0_i32_1 = arith.constant 0 : i32
    return %c0_i32, %c0_i32_0 : i32, i32
  }
  func.func @transform_4(%arg0: i32) -> (i32, i32) {
    %c0_i32 = arith.constant 0 : i32
    %c0_i32_0 = arith.constant 0 : i32
    %c0_i32_1 = arith.constant 0 : i32
    return %c0_i32, %c0_i32_0 : i32, i32
  }
  func.func @transform_5(%arg0: i32) -> (i32, i32) {
    %c0_i32 = arith.constant 0 : i32
    %c0_i32_0 = arith.constant 0 : i32
    %c0_i32_1 = arith.constant 0 : i32
    return %c0_i32, %c0_i32_0 : i32, i32
  }
  func.func @transform_6(%arg0: i32) -> (i32, i32) {
    %c0_i32 = arith.constant 0 : i32
    %c0_i32_0 = arith.constant 0 : i32
    %c0_i32_1 = arith.constant 0 : i32
    return %c0_i32, %c0_i32_0 : i32, i32
  }
  func.func @transform_7(%arg0: i32) -> (i32, i32) {
    %c0_i32 = arith.constant 0 : i32
    %c0_i32_0 = arith.constant 0 : i32
    return %arg0, %c0_i32 : i32, i32
  }
}

</mosaic_0001>

<bundles_post_ra>
// kernel: discriminator_forward.1
= control target key start
LH: loop header
LB: loop body
LE: loop exit
PB: predicated region body
PF: predicated region fallthrough
CT: control target
= control target key end

     0   :  { %v687_v3 = vmov 0.0   ;;  %vm57_vm0 = vcmask 130048   ;;  %vm689_vm1 = vmmov 0   ;;  %vm435_vm2 = vcmask 261120   ;;  %s978_s1 = inlined_call_operand.vmem [shape: f32[16,512], index: 1, kind: input, shape index: {}]   ;;  %s979_s0 = inlined_call_operand.vmem [shape: f32[8,16], index: 0, kind: input, shape index: {}]   ;;  %s980_s3 = inlined_call_operand.vmem [shape: f32[512,32], index: 3, kind: input, shape index: {}]   ;;  %s981_s2 = inlined_call_operand.vmem [shape: f32[1,512], index: 2, kind: input, shape index: {}]   ;;  %s982_s5 = inlined_call_operand.vmem [shape: f32[32,128], index: 5, kind: input, shape index: {}]   ;;  %s983_s4 = inlined_call_operand.vmem [shape: f32[1,32], index: 4, kind: input, shape index: {}]   ;;  %s984_s6 = inlined_call_operand.vmem [shape: f32[1,128], index: 6, kind: input, shape index: {}]   ;;  %s985_s7 = inlined_call_operand.vmem [shape: f32[8,4], index: 7, kind: output, shape index: {}]  }
   0x1   :  { %v28_v0 = vld [vmem:[%s978_s1 + $0x8] sm:$0xff]  ;;  %v27_v2 = vld [vmem:[%s978_s1] sm:$0xff]  ;;  %125 = vmatprep.mubr.f32.mxu1 %v687_v3  ;;  %v30_v6 = vld [vmem:[%s978_s1 + $0x18] sm:$0xff]  ;;  %vm509_vm3 = vcmask 31744  }
   0x2   :  { %v32_v1 = vld [vmem:[%s978_s1 + $0x28] sm:$0xff]  ;;  %v31_v5 = vld [vmem:[%s978_s1 + $0x20] sm:$0xff]  ;;  %v34_v9 = vld [vmem:[%s978_s1 + $0x38] sm:$0xff] }
   0x3   :  { %v606_v4 = vpack.c.bf16 %v32_v1, %v28_v0  ;;  %v608_v7 = vpack.c.bf16 %v31_v5, %v27_v2  ;;  %v26_v8 = vld [vmem:[%s979_s0] sm:$0xff]  ;;  %v29_v10 = vld [vmem:[%s978_s1 + $0x10] sm:$0xff]  ;;  %v610_v12 = vpack.c.bf16 %v34_v9, %v30_v6  ;;  %v228_v14 = vld [vmem:[%s980_s3 + $0x88] sm:$0xff] }
   0x4   :  { %v33_v11 = vld [vmem:[%s978_s1 + $0x30] sm:$0xff]  ;;  %v227_v13 = vld [vmem:[%s980_s3 + $0x80] sm:$0xff]  ;;  %v212_v18 = vld [vmem:[%s980_s3 + $0x8] sm:$0xff] }
   0x5   :  { %607 = vmatprep.subr.bf16.mxu1 %v606_v4  ;;  %v211_v15 = vld [vmem:[%s980_s3] sm:$0xff]  ;;  %v612_v16 = vpack.c.bf16 %v33_v11, %v29_v10  ;;  %v614_v17 = vpack.c.bf16 %v228_v14, %v227_v13  ;;  %v229_v19 = vld [vmem:[%s980_s3 + $0x90] sm:$0xff]  ;;  %v230_v20 = vld [vmem:[%s980_s3 + $0x98] sm:$0xff] }
   0x6   :  { %609 = vmatpush1.bf16.msra.mxu1 %v608_v7  ;;  %v616_v21 = vpack.c.bf16 %v212_v18, %v211_v15  ;;  %v618_v22 = vpack.c.bf16 %v230_v20, %v229_v19  ;;  %v259_v23 = vld [vmem:[%s980_s3 + $0x180] sm:$0xff]  ;;  %v260_v24 = vld [vmem:[%s980_s3 + $0x188] sm:$0xff]  ;;  %v213_v25 = vld [vmem:[%s980_s3 + $0x10] sm:$0xff] }
   0x7   :  { %611 = vmatprep.subr.bf16.mxu1 %v610_v12  ;;  %615 = vmatprep.subr.bf16.mxu0 %v614_v17  ;;  %v646_v26 = vpack.c.bf16 %v260_v24, %v259_v23  ;;  %v214_v27 = vld [vmem:[%s980_s3 + $0x18] sm:$0xff]  ;;  %v243_v28 = vld [vmem:[%s980_s3 + $0x100] sm:$0xff]  ;;  %v244_v29 = vld [vmem:[%s980_s3 + $0x108] sm:$0xff] }
   0x8   :  { %617 = vmatpush3.bf16.msra.mxu0 %v616_v21  ;;  %v620_v30 = vpack.c.bf16 %v214_v27, %v213_v25  ;;  %v231_v31 = vld [vmem:[%s980_s3 + $0xa0] sm:$0xff]  ;;  %v232_v32 = vld [vmem:[%s980_s3 + $0xa8] sm:$0xff]  ;;  %v261_v33 = vld [vmem:[%s980_s3 + $0x190] sm:$0xff]  ;;  %v648_v34 = vpack.c.bf16 %v244_v29, %v243_v28 }
   0x9   :  { %515 = vmatmul.mubr.msk.f32.vlgmr.msra.gmra.mrb[0].mxu1 %vm57_vm0, %v26_v8  ;;  %v622_v35 = vpack.c.bf16 %v232_v32, %v231_v31  ;;  %v262_v36 = vld [vmem:[%s980_s3 + $0x198] sm:$0xff]  ;;  %v215_v37 = vld [vmem:[%s980_s3 + $0x20] sm:$0xff]  ;;  %v216_v38 = vld [vmem:[%s980_s3 + $0x28] sm:$0xff]  ;;  %619 = vmatprep.subr.bf16.mxu0 %v618_v22 }
   0xa   :  { %613 = vmatpush1.bf16.msra.mxu1 %v612_v16  ;;  %196 = vmatprep.mubr.f32.mxu1 %v687_v3  ;;  %v650_v39 = vpack.c.bf16 %v262_v36, %v261_v33  ;;  %v245_v40 = vld [vmem:[%s980_s3 + $0x110] sm:$0xff]  ;;  %v246_v41 = vld [vmem:[%s980_s3 + $0x118] sm:$0xff]  ;;  %v263_v44 = vld [vmem:[%s980_s3 + $0x1a0] sm:$0xff]  ;;  %v624_v46 = vpack.c.bf16 %v216_v38, %v215_v37 }
   0xb   :  { %647 = vmatprep.subr.bf16.mxu1 %v646_v26  ;;  %v233_v42 = vld [vmem:[%s980_s3 + $0xb0] sm:$0xff]  ;;  %v234_v43 = vld [vmem:[%s980_s3 + $0xb8] sm:$0xff]  ;;  %v264_v45 = vld [vmem:[%s980_s3 + $0x1a8] sm:$0xff]  ;;  %v652_v47 = vpack.c.bf16 %v246_v41, %v245_v40 }
   0xc   :  { %621 = vmatpush3.bf16.msra.mxu0 %v620_v30  ;;  %v626_v48 = vpack.c.bf16 %v234_v43, %v233_v42  ;;  %v217_v49 = vld [vmem:[%s980_s3 + $0x30] sm:$0xff]  ;;  %v218_v50 = vld [vmem:[%s980_s3 + $0x38] sm:$0xff]  ;;  %v247_v51 = vld [vmem:[%s980_s3 + $0x120] sm:$0xff]  ;;  %v654_v52 = vpack.c.bf16 %v264_v45, %v263_v44 }
   0xd   :  { %516 = vmatmul.mubr.msk.f32.vlgmr.msra.gmra.mrb[2].mxu1 %vm57_vm0, %v26_v8  ;;  %623 = vmatprep.subr.bf16.mxu0 %v622_v35  ;;  %v248_v53 = vld [vmem:[%s980_s3 + $0x128] sm:$0xff]  ;;  %v235_v54 = vld [vmem:[%s980_s3 + $0xc0] sm:$0xff]  ;;  %v265_v56 = vld [vmem:[%s980_s3 + $0x1b0] sm:$0xff]  ;;  %v628_v58 = vpack.c.bf16 %v218_v50, %v217_v49 }
   0xe   :  { %649 = vmatpush3.bf16.msra.mxu1 %v648_v34  ;;  %v236_v55 = vld [vmem:[%s980_s3 + $0xc8] sm:$0xff]  ;;  %v266_v57 = vld [vmem:[%s980_s3 + $0x1b8] sm:$0xff]  ;;  %v656_v59 = vpack.c.bf16 %v248_v53, %v247_v51  ;;  %v219_v61 = vld [vmem:[%s980_s3 + $0x40] sm:$0xff] }
   0xf   :  { %651 = vmatprep.subr.bf16.mxu1 %v650_v39  ;;  %v630_v60 = vpack.c.bf16 %v236_v55, %v235_v54  ;;  %v220_v62 = vld [vmem:[%s980_s3 + $0x48] sm:$0xff]  ;;  %v249_v63 = vld [vmem:[%s980_s3 + $0x130] sm:$0xff]  ;;  %v658_v0 = vpack.c.bf16 %v266_v57, %v265_v56  ;;  %v250_v1 = vld [vmem:[%s980_s3 + $0x138] sm:$0xff] }
  0x10   :  { %625 = vmatpush3.bf16.msra.mxu0 %v624_v46  ;;  %v237_v2 = vld [vmem:[%s980_s3 + $0xd0] sm:$0xff]  ;;  %v238_v4 = vld [vmem:[%s980_s3 + $0xd8] sm:$0xff]  ;;  %v267_v5 = vld [vmem:[%s980_s3 + $0x1c0] sm:$0xff]  ;;  %v632_v7 = vpack.c.bf16 %v220_v62, %v219_v61  ;;  %v660_v8 = vpack.c.bf16 %v250_v1, %v249_v63 }
  0x11   :  { %627 = vmatprep.subr.bf16.mxu0 %v626_v48  ;;  %v268_v6 = vld [vmem:[%s980_s3 + $0x1c8] sm:$0xff]  ;;  %v634_v9 = vpack.c.bf16 %v238_v4, %v237_v2  ;;  %v221_v10 = vld [vmem:[%s980_s3 + $0x50] sm:$0xff]  ;;  %v222_v11 = vld [vmem:[%s980_s3 + $0x58] sm:$0xff] }
  0x12   :  { %653 = vmatpush3.bf16.msra.mxu1 %v652_v47  ;;  %v662_v12 = vpack.c.bf16 %v268_v6, %v267_v5  ;;  %v251_v13 = vld [vmem:[%s980_s3 + $0x140] sm:$0xff]  ;;  %v252_v14 = vld [vmem:[%s980_s3 + $0x148] sm:$0xff]  ;;  %v636_v15 = vpack.c.bf16 %v222_v11, %v221_v10  ;;  %v269_v19 = vld [vmem:[%s980_s3 + $0x1d0] sm:$0xff]  ;;  %v37_v47 = vlaneseq }
  0x13   :  { %655 = vmatprep.subr.bf16.mxu1 %v654_v52  ;;  %v664_v16 = vpack.c.bf16 %v252_v14, %v251_v13  ;;  %v239_v17 = vld [vmem:[%s980_s3 + $0xe0] sm:$0xff]  ;;  %v240_v18 = vld [vmem:[%s980_s3 + $0xe8] sm:$0xff]  ;;  %v270_v21 = vld [vmem:[%s980_s3 + $0x1d8] sm:$0xff]  ;;  %v688_v14 = vmov 0.0|0.0  }
  0x14   :  { %629 = vmatpush3.bf16.msra.mxu0 %v628_v58  ;;  %v638_v20 = vpack.c.bf16 %v240_v18, %v239_v17  ;;  %v223_v22 = vld [vmem:[%s980_s3 + $0x60] sm:$0xff]  ;;  %v224_v23 = vld [vmem:[%s980_s3 + $0x68] sm:$0xff]  ;;  %v666_v24 = vpack.c.bf16 %v270_v21, %v269_v19  ;;  %v253_v26 = vld [vmem:[%s980_s3 + $0x150] sm:$0xff]  ;;  %v38_v48 = vshrl.u32 %v37_v47, 7 }
  0x15   :  { %631 = vmatprep.subr.bf16.mxu0 %v630_v60  ;;  %v640_v25 = vpack.c.bf16 %v224_v23, %v223_v22  ;;  %v254_v27 = vld [vmem:[%s980_s3 + $0x158] sm:$0xff]  ;;  %v241_v29 = vld [vmem:[%s980_s3 + $0xf0] sm:$0xff]  ;;  %v271_v31 = vld [vmem:[%s980_s3 + $0x1e0] sm:$0xff] }
  0x16   :  { %657 = vmatpush3.bf16.msra.mxu1 %v656_v59  ;;  %v668_v28 = vpack.c.bf16 %v254_v27, %v253_v26  ;;  %v242_v30 = vld [vmem:[%s980_s3 + $0xf8] sm:$0xff]  ;;  %v272_v33 = vld [vmem:[%s980_s3 + $0x1e8] sm:$0xff]  ;;  %v225_v34 = vld [vmem:[%s980_s3 + $0x70] sm:$0xff]  ;;  %v39_v49 = vsub.s32 0, %v38_v48  ;;  %v43_v51 = vsub.s32 1, %v38_v48  ;;  %v47_v53 = vsub.s32 2, %v38_v48 }
  0x17   :  { %659 = vmatprep.subr.bf16.mxu1 %v658_v0  ;;  %v642_v32 = vpack.c.bf16 %v242_v30, %v241_v29  ;;  %v226_v35 = vld [vmem:[%s980_s3 + $0x78] sm:$0xff]  ;;  %v670_v36 = vpack.c.bf16 %v272_v33, %v271_v31  ;;  %v255_v38 = vld [vmem:[%s980_s3 + $0x160] sm:$0xff]  ;;  %v256_v39 = vld [vmem:[%s980_s3 + $0x168] sm:$0xff]  ;;  %v51_v55 = vsub.s32 3, %v38_v48 }
  0x18   :  { %633 = vmatpush3.bf16.msra.mxu0 %v632_v7  ;;  %v644_v37 = vpack.c.bf16 %v226_v35, %v225_v34  ;;  %v672_v40 = vpack.c.bf16 %v256_v39, %v255_v38  ;;  %v273_v41 = vld [vmem:[%s980_s3 + $0x1f0] sm:$0xff]  ;;  %v274_v42 = vld [vmem:[%s980_s3 + $0x1f8] sm:$0xff]  ;;  %v35_v50 = vld [vmem:[%s981_s2] sm:$0xf] }
  0x19   :  { %635 = vmatprep.subr.bf16.mxu0 %v634_v9  ;;  %v674_v43 = vpack.c.bf16 %v274_v42, %v273_v41  ;;  %v257_v44 = vld [vmem:[%s980_s3 + $0x170] sm:$0xff]  ;;  %v258_v45 = vld [vmem:[%s980_s3 + $0x178] sm:$0xff]  ;;  %v40_v52 = vrot.slane %v35_v50, %v39_v49  ;;  %v44_v54 = vrot.slane %v35_v50, %v43_v51  ;;  %v48_v59 = vrot.slane %v35_v50, %v47_v53  ;;  %v424_v11 = vld [vmem:[%s982_s5] sm:$0xff] }
  0x1a   :  { %661 = vmatpush3.bf16.msra.mxu1 %v660_v8  ;;  %v676_v46 = vpack.c.bf16 %v258_v45, %v257_v44  ;;  %v52_v61 = vrot.slane %v35_v50, %v51_v55  ;;  %v517_v21 = vld [vmem:[%s983_s4] ss:$0 sm:$0xff] }
  0x1b   :  { %663 = vmatprep.subr.bf16.mxu1 %v662_v12  ;;  %v425_v12 = vld [vmem:[%s982_s5 + $0x8] sm:$0xff] }
  0x1c   :  { %637 = vmatpush3.bf16.msra.mxu0 %v636_v15  ;;  %v679_v13 = vpack.c.bf16 %v425_v12, %v424_v11  ;;  %v426_v15 = vld [vmem:[%s982_s5 + $0x10] sm:$0xff] }
  0x1d   :  { %639 = vmatprep.subr.bf16.mxu0 %v638_v20 }
  0x1e   :  { %665 = vmatpush3.bf16.msra.mxu1 %v664_v16  ;;  %v427_v16 = vld [vmem:[%s982_s5 + $0x18] sm:$0xff] }
  0x1f   :  { %667 = vmatprep.subr.bf16.mxu1 %v666_v24  ;;  %v682_v17 = vpack.c.bf16 %v427_v16, %v426_v15 }
  0x20   :  { %641 = vmatpush3.bf16.msra.mxu0 %v640_v25 }
  0x21   :  { %643 = vmatprep.subr.bf16.mxu0 %v642_v32 }
  0x22   :  { %669 = vmatpush3.bf16.msra.mxu1 %v668_v28 }
  0x23   :  { %671 = vmatprep.subr.bf16.mxu1 %v670_v36 }
  0x24   :  { %645 = vmatpush3.bf16.msra.mxu0 %v644_v37 }
  0x25   :  { %678 = vmatprep.subr.bf16.mxu0 %v688_v14 }
  0x26   :  { %673 = vmatpush3.bf16.msra.mxu1 %v672_v40 }
  0x27   :  { %675 = vmatprep.subr.bf16.mxu1 %v674_v43 }
  0x2a   :  { %677 = vmatpush3.bf16.msra.mxu1 %v676_v46 }
  0xdc   :  { %v127_v56 = vpop.f32.mrb[0].mxu1 }
  0xdd   :  { %v128_v57 = vadd.f32 %v127_v56, %v40_v52  ;;  %v129_v58 = vpop.f32.mrb[1].mxu1 }
  0xde   :  { %v130_v60 = vadd.f32 %v129_v58, %v44_v54 }
  0xdf   :  { %v203_v62 = vmul.f32 0.1, %v128_v57 }
  0xe0   :  { %v198_v63 = vpop.f32.mrb[2].mxu1  ;;  %v204_v0 = vmul.f32 0.1, %v130_v60 }
  0xe1   :  { %v199_v1 = vadd.f32 %v198_v63, %v48_v59  ;;  %v200_v2 = vpop.f32.mrb[3].mxu1  ;;  %v207_v6 = vmax.f32 %v128_v57, %v203_v62 }
  0xe2   :  { %v201_v4 = vadd.f32 %v200_v2, %v52_v61  ;;  %v208_v5 = vmax.f32 %v130_v60, %v204_v0 }
  0xe3   :  { %v205_v7 = vmul.f32 0.1, %v199_v1 }
  0xe4   :  { %v206_v8 = vmul.f32 0.1, %v201_v4  ;;  %346 = vmatprep.mubr.f32.mxu0 %v208_v5 }
  0xe5   :  { %347 = vmatmul.mubr.f32.vlgmr.msra.gmra.mrb[0].mxu0 %v207_v6  ;;  %v209_v10 = vmax.f32 %v199_v1, %v205_v7 }
  0xe6   :  { %v210_v9 = vmax.f32 %v201_v4, %v206_v8  ;;  %680 = vmatpush3.bf16.msra.mxu0 %v679_v13  ;;  %603 = vmatprep.mubr.msk.f32.mxu0 %vm689_vm1, %v687_v3  ;;  %v518_v3 = vld [vmem:[%s984_s6] ss:$0 sm:$0xff] }
  0xe7   :  { %681 = vmatprep.subr.bf16.mxu0 %v688_v14 }
  0xe8   :  { %416 = vmatprep.mubr.f32.mxu1 %v210_v9 }
  0xe9   :  { %417 = vmatmul.mubr.f32.vlgmr.msra.gmra.mrb[4].mxu1 %v209_v10 }
  0xea   :  { %683 = vmatpush3.bf16.msra.mxu0 %v682_v17 }
 0x1b8   :  { %v552_v18 = vpop.f32.mrb[0].mxu0 }
 0x1b9   :  { %v553_v19 = vpop.f32.mrb[1].mxu0 }
 0x1ba   :  { %v554_v20 = vadd.f32 %v553_v19, %v552_v18 }
 0x1bc   :  { %v587_v22 = vpop.f32.mrb[4].mxu1  ;;  %v349_v24 = vadd.f32 %v554_v20, %v517_v21 }
 0x1bd   :  { %v588_v23 = vpop.f32.mrb[5].mxu1 }
 0x1be   :  { %v589_v25 = vadd.f32 %v588_v23, %v587_v22 }
 0x1c0   :  { %v419_v26 = vadd.f32 %v589_v25, %v349_v24 }
 0x1c2   :  { %v422_v27 = vmul.f32 0.1, %v419_v26 }
 0x1c4   :  { %v423_v28 = vmax.f32 %v419_v26, %v422_v27 }
 0x1c6   :  { %604 = vmatmul.mubr.msk.f32.vlgmr.msra.gmra.mrb[2].mxu0 %vm435_vm2, %v423_v28 }
 0x299   :  { %v505_v29 = vpop.f32.mrb[2].mxu0 }
 0x29a   :  { %v506_v30 = vadd.f32 %v518_v3, %v505_v29  ;;  %v605_v31 = vpop.f32.mrb[3].mxu0 }
 0x29c   :  { %510 = vst.msk [vmem:[%s985_s7] sm:$0xff] %vm509_vm3, %v506_v30 }

</bundles_post_ra>
